<compile_context>
chip_gen: v6e
topology: v6e:2x2x1
jax: 0.10.0
libtpu: 0.0.40
codegen_flags: <defaults>
</compile_context>

<pallas_src>
import functools

import jax
import jax.numpy as jnp
from jax.experimental import pallas as pl
from jax.experimental.pallas import tpu as pltpu


def _round_up(x, m):
    return ((x + m - 1) // m) * m


# --------------------------------------------------------------------------
# Stage 1: fused [W | film_gamma | film_beta] projection + FiLM modulation + ReLU
# --------------------------------------------------------------------------
def film_message_kernel(x_ref, wfused_ref, msg_ref, *, out_p):
    # x_ref: [ts, in_p] bf16, wfused_ref: [in_p, 3*out_p] bf16
    fused = jnp.dot(x_ref[...], wfused_ref[...],
                    preferred_element_type=jnp.float32)      # [ts, 3*out_p] f32
    wmsg = fused[:, :out_p]                                   # 128-aligned slices
    gamma = fused[:, out_p:2 * out_p]
    beta = fused[:, 2 * out_p:]
    msg = jnp.maximum(gamma * wmsg + beta, 0.0)               # FiLM + ReLU (VPU)
    msg_ref[...] = msg.astype(msg_ref.dtype)                  # bf16 store


# --------------------------------------------------------------------------
# Stage 2: h = A @ msg  (accumulated over src tiles)  -> LayerNorm finalize
# --------------------------------------------------------------------------
def aggregate_ln_kernel(adj_ref, msg_ref, ln_g_ref, ln_b_ref, out_ref, acc_ref,
                        *, out_size):
    k = pl.program_id(1)

    @pl.when(k == 0)
    def _():
        acc_ref[...] = jnp.zeros_like(acc_ref)

    acc_ref[...] += jnp.dot(adj_ref[...], msg_ref[...],
                            preferred_element_type=jnp.float32)

    @pl.when(k == pl.num_programs(1) - 1)
    def _():
        h = acc_ref[...]                                      # [td, out_p] f32
        lane = jax.lax.broadcasted_iota(jnp.int32, h.shape, dimension=1)
        mask = lane < out_size                                # valid feature lanes
        inv_n = 1.0 / out_size
        mean = jnp.sum(jnp.where(mask, h, 0.0), axis=-1, keepdims=True) * inv_n
        cent = jnp.where(mask, h - mean, 0.0)
        var = jnp.sum(cent * cent, axis=-1, keepdims=True) * inv_n
        hn = cent * jax.lax.rsqrt(var + 1e-5)                 # eps matches torch
        y = hn * ln_g_ref[...] + ln_b_ref[...]
        # Dropout: eval-mode identity.
        out_ref[...] = jnp.where(mask, y, 0.0).astype(out_ref.dtype)


# --------------------------------------------------------------------------
# Wrapper: padding, tiling, two pallas_calls
# --------------------------------------------------------------------------
def gnn_film_forward(x, w, film_w, adj, ln_g, ln_b, *,
                     tile_dst=256, tile_src=512):
    """x: [n_src, in], w: [in, out], film_w: [in, 2*out], adj: [n_dst, n_src],
    ln_g/ln_b: [out]  ->  [n_dst, out] (float32)."""
    n_src, in_size = x.shape
    out_size = w.shape[1]
    n_dst = adj.shape[0]

    # Lane-dense feature dims (multiples of 128).
    in_p = _round_up(in_size, 128)
    out_p = _round_up(out_size, 128)

    # Node-axis tiles: src tile must be a multiple of 128 (lane dim of adj
    # blocks), dst tile a multiple of 8 (sublane dim).  Sized so double-buffered
    # tiles stay far under v7x's 32 MiB default scoped VMEM.
    ts = min(tile_src, _round_up(n_src, 128))
    td = min(tile_dst, _round_up(n_dst, 8))
    n_src_p = _round_up(n_src, ts)
    n_dst_p = _round_up(n_dst, td)

    # ---- zero-pad operands (bf16 MXU inputs; 0/1 adjacency is exact in bf16) --
    xp = jnp.zeros((n_src_p, in_p), jnp.bfloat16)
    xp = xp.at[:n_src, :in_size].set(x.astype(jnp.bfloat16))

    wfused = jnp.zeros((in_p, 3 * out_p), jnp.bfloat16)
    wfused = wfused.at[:in_size, 0:out_size].set(w.astype(jnp.bfloat16))
    wfused = wfused.at[:in_size, out_p:out_p + out_size].set(
        film_w[:, :out_size].astype(jnp.bfloat16))
    wfused = wfused.at[:in_size, 2 * out_p:2 * out_p + out_size].set(
        film_w[:, out_size:].astype(jnp.bfloat16))

    adjp = jnp.zeros((n_dst_p, n_src_p), jnp.bfloat16)
    adjp = adjp.at[:n_dst, :n_src].set(adj.astype(jnp.bfloat16))

    ln_gp = jnp.zeros((1, out_p), jnp.float32)
    ln_gp = ln_gp.at[0, :out_size].set(ln_g.reshape(-1).astype(jnp.float32))
    ln_bp = jnp.zeros((1, out_p), jnp.float32)
    ln_bp = ln_bp.at[0, :out_size].set(ln_b.reshape(-1).astype(jnp.float32))

    # ---- stage 1: per-source-tile fused projection + FiLM + ReLU -------------
    msg = pl.pallas_call(
        functools.partial(film_message_kernel, out_p=out_p),
        out_shape=jax.ShapeDtypeStruct((n_src_p, out_p), jnp.bfloat16),
        grid=(n_src_p // ts,),
        in_specs=[
            pl.BlockSpec((ts, in_p), lambda i: (i, 0)),
            pl.BlockSpec((in_p, 3 * out_p), lambda i: (0, 0)),
        ],
        out_specs=pl.BlockSpec((ts, out_p), lambda i: (i, 0)),
        compiler_params=pltpu.CompilerParams(
            dimension_semantics=("parallel",)),
        cost_estimate=pl.CostEstimate(
            flops=2 * n_src_p * in_p * 3 * out_p,
            transcendentals=0,
            bytes_accessed=xp.size * 2 + wfused.size * 2 + n_src_p * out_p * 2),
    )(xp, wfused)

    # ---- stage 2: tiled aggregation + LayerNorm finalize ---------------------
    out_padded = pl.pallas_call(
        functools.partial(aggregate_ln_kernel, out_size=out_size),
        out_shape=jax.ShapeDtypeStruct((n_dst_p, out_p), jnp.float32),
        grid=(n_dst_p // td, n_src_p // ts),
        in_specs=[
            pl.BlockSpec((td, ts), lambda i, k: (i, k)),        # adjacency tile
            pl.BlockSpec((ts, out_p), lambda i, k: (k, 0)),     # message tile
            pl.BlockSpec((1, out_p), lambda i, k: (0, 0)),      # ln gamma (shared)
            pl.BlockSpec((1, out_p), lambda i, k: (0, 0)),      # ln beta  (shared)
        ],
        out_specs=pl.BlockSpec((td, out_p), lambda i, k: (i, 0)),
        scratch_shapes=[pltpu.VMEM((td, out_p), jnp.float32)],  # h accumulator
        compiler_params=pltpu.CompilerParams(
            dimension_semantics=("parallel", "arbitrary")),
        cost_estimate=pl.CostEstimate(
            flops=2 * n_dst_p * n_src_p * out_p,
            transcendentals=0,
            bytes_accessed=adjp.size * 2 + msg.size * 2 + n_dst_p * out_p * 4),
    )(adjp, msg, ln_gp, ln_bp)

    return out_padded[:n_dst, :out_size]


if __name__ == "__main__":
    in_size = 32
    out_size = 32
    n_src = 16     # nodes on layer i of the NodeFlow
    n_dst = 8      # nodes on layer i+1

    key = jax.random.PRNGKey(0)
    k_x, k_w, k_f, k_a = jax.random.split(key, 4)

    x = jax.random.normal(k_x, (n_src, in_size), dtype=jnp.float32)
    w = jax.random.normal(k_w, (in_size, out_size), dtype=jnp.float32) * 0.1
    film_w = jax.random.normal(k_f, (in_size, 2 * out_size), dtype=jnp.float32) * 0.1
    ln_g = jnp.ones((out_size,), dtype=jnp.float32)      # LayerNorm weight
    ln_b = jnp.zeros((out_size,), dtype=jnp.float32)     # LayerNorm bias

    # dense 0/1 block adjacency: dst node receives from a random subset of src
    adj = (jax.random.uniform(k_a, (n_dst, n_src)) < 0.4).astype(jnp.float32)

    out = gnn_film_forward(x, w, film_w, adj, ln_g, ln_b)
    jax.block_until_ready(out)
    assert out.shape == (n_dst, out_size)

    # ---- reference with matching (bf16 matmul, f32 accumulate) numerics ------
    xb = x.astype(jnp.bfloat16)
    wm = jnp.dot(xb, w.astype(jnp.bfloat16), preferred_element_type=jnp.float32)
    fw = jnp.dot(xb, film_w.astype(jnp.bfloat16), preferred_element_type=jnp.float32)
    gamma_r, beta_r = fw[:, :out_size], fw[:, out_size:]
    msg_r = jnp.maximum(gamma_r * wm + beta_r, 0.0).astype(jnp.bfloat16)
    h_r = jnp.dot(adj.astype(jnp.bfloat16), msg_r, preferred_element_type=jnp.float32)
    mu = h_r.mean(-1, keepdims=True)
    var = ((h_r - mu) ** 2).mean(-1, keepdims=True)
    ref = (h_r - mu) * jax.lax.rsqrt(var + 1e-5) * ln_g[None, :] + ln_b[None, :]

    assert jnp.allclose(out, ref, atol=2e-3, rtol=2e-3), (
        "mismatch vs reference: max abs err = %g" % float(jnp.max(jnp.abs(out - ref))))

    print("KERNEL_OK")
</pallas_src>

<mosaic_0001>
module attributes {stable_mosaic.version = 11 : i64} {
  func.func @film_message_kernel(%arg0: i32, %arg1: memref<128x128xbf16, #tpu.memory_space<vmem>>, %arg2: memref<128x384xbf16, #tpu.memory_space<vmem>>, %arg3: memref<128x128xbf16, #tpu.memory_space<vmem>>) attributes {dimension_semantics = [#tpu.dimension_semantics<parallel>], iteration_bounds = array<i64: 1>, scalar_prefetch = 0 : i64, scratch_operands = 0 : i64, tpu.core_type = #tpu.core_type<tc>, window_params = [{transform_indices = @transform_0, window_bounds = array<i64: 128, 128>}, {pipeline_mode = #tpu.pipeline_mode<synchronous>, transform_indices = @transform_1, window_bounds = array<i64: 128, 384>}, {transform_indices = @transform_2, window_bounds = array<i64: 128, 128>}]} {
    %c0 = arith.constant 0 : index
    %c0_0 = arith.constant 0 : index
    %0 = vector.load %arg1[%c0, %c0_0] : memref<128x128xbf16, #tpu.memory_space<vmem>>, vector<128x128xbf16>
    %c0_1 = arith.constant 0 : index
    %c0_2 = arith.constant 0 : index
    %1 = vector.load %arg2[%c0_1, %c0_2] : memref<128x384xbf16, #tpu.memory_space<vmem>>, vector<128x384xbf16>
    %cst = arith.constant dense<0.000000e+00> : vector<128x384xf32>
    %2 = tpu.matmul %0, %1, %cst {dimension_numbers = #tpu.dot_dimension_numbers<[1], [0], [0], [1], [0, 0, 1, 1], [], []>} : vector<128x128xbf16>, vector<128x384xbf16>, vector<128x384xf32> -> vector<128x384xf32>
    %3 = vector.extract_strided_slice %2 {offsets = [0, 0], sizes = [128, 128], strides = [1, 1]} : vector<128x384xf32> to vector<128x128xf32>
    %4 = vector.extract_strided_slice %2 {offsets = [0, 128], sizes = [128, 128], strides = [1, 1]} : vector<128x384xf32> to vector<128x128xf32>
    %5 = vector.extract_strided_slice %2 {offsets = [0, 256], sizes = [128, 128], strides = [1, 1]} : vector<128x384xf32> to vector<128x128xf32>
    %6 = arith.mulf %4, %3 : vector<128x128xf32>
    %7 = arith.addf %6, %5 : vector<128x128xf32>
    %cst_3 = arith.constant 0.000000e+00 : f32
    %8 = vector.broadcast %cst_3 : f32 to vector<128x128xf32>
    %9 = arith.maximumf %7, %8 : vector<128x128xf32>
    %10 = arith.truncf %9 : vector<128x128xf32> to vector<128x128xbf16>
    %c0_4 = arith.constant 0 : index
    %c0_5 = arith.constant 0 : index
    %11 = vector.load %arg3[%c0_4, %c0_5] : memref<128x128xbf16, #tpu.memory_space<vmem>>, vector<128x128xbf16>
    tpu.vector_store %arg3[%c0_4, %c0_5], %10 {strides = array<i32>} : memref<128x128xbf16, #tpu.memory_space<vmem>>, vector<128x128xbf16>,
    return
  }
  func.func @transform_0(%arg0: i32) -> (i32, i32) {
    %c0_i32 = arith.constant 0 : i32
    %c0_i32_0 = arith.constant 0 : i32
    return %arg0, %c0_i32 : i32, i32
  }
  func.func @transform_1(%arg0: i32) -> (i32, i32) {
    %c0_i32 = arith.constant 0 : i32
    %c0_i32_0 = arith.constant 0 : i32
    %c0_i32_1 = arith.constant 0 : i32
    return %c0_i32, %c0_i32_0 : i32, i32
  }
  func.func @transform_2(%arg0: i32) -> (i32, i32) {
    %c0_i32 = arith.constant 0 : i32
    %c0_i32_0 = arith.constant 0 : i32
    return %arg0, %c0_i32 : i32, i32
  }
}

</mosaic_0001>

<bundles_post_ra>
// kernel: tpu_custom_call.1
= control target key start
LH: loop header
LB: loop body
LE: loop exit
PB: predicated region body
PF: predicated region fallthrough
CT: control target
= control target key end

     0   :  { %7 = vsyncpa [#allocation3], 0  ;;  %s940_s0 = inlined_call_operand.hbm [shape: bf16[128,128], index: 0, kind: input, shape index: {}]   ;;  %s941_s1 = inlined_call_operand.hbm [shape: bf16[128,384], index: 1, kind: input, shape index: {}]   ;;  %s942_s2 = inlined_call_operand.hbm [shape: bf16[128,128], index: 2, kind: output, shape index: {}]  }
   0x1   :  { %8 = vsyncpa [#allocation6], 0 }
   0x2   :  { %9 = vsyncpa [#allocation4], 0  ;;  %s894_s9 = smov [#allocation2]  }
   0x3   :  { %s15_s10 = sshll.u32 %s894_s9, 4  ;;  %s16_s10 = int_to_ptr.vmem [resolvable:$true] %s15_s10 }
   0x4   :  { %s836_s11 = scalar_lea.vmem %s16_s10, 1024  ;;  %p841_p1 = scmp.lt.s32.totalorder %s16_s10, %s16_s10 }
   0x5   :  { %p837_p0 = scmp.ne.s32.totalorder %s16_s10, %s836_s11  ;;  %p842_p2 = scmp.lt.s32.totalorder %s836_s11, %s836_s11 }
   0x7   :  { %p843_p3 = por %p842_p2, %p841_p1 }
   0x9   :  { %p844_p4 = pnand %p843_p3, %p837_p0 }
   0xb   :  { %847 = shalt.err (!%p844_p4)
}
   0xc   :  { %s895_s12 = smov 64   ;;  %s896_s13 = smov 4  }
   0xd   :  { %21 = dma.hbm_to_vmem [thread:$0]  %s940_s0, 1024, %s16_s10, [#allocation3], %s895_s12, %s895_s12, %s896_s13  }
   0xe   :  { %s897_s16 = smov [#allocation5]  }
   0xf   :  { %s27_s17 = sshll.u32 %s897_s16, 4  ;;  %s28_s17 = int_to_ptr.vmem [resolvable:$true] %s27_s17 }
  0x10   :  { %s856_s18 = scalar_lea.vmem %s28_s17, 3072  ;;  %p861_p6 = scmp.lt.s32.totalorder %s28_s17, %s28_s17 }
  0x11   :  { %p857_p5 = scmp.ne.s32.totalorder %s28_s17, %s856_s18  ;;  %p862_p7 = scmp.lt.s32.totalorder %s856_s18, %s856_s18 }
  0x13   :  { %p863_p8 = por %p862_p7, %p861_p6 }
  0x15   :  { %p864_p9 = pnand %p863_p8, %p857_p5 }
  0x17   :  { %867 = shalt.err (!%p864_p9)
}
  0x18   :  { %s898_s19 = smov 192   ;;  %s899_s20 = smov 12  }
  0x19   :  { %33 = dma.hbm_to_vmem [thread:$0]  %s941_s1, 3072, %s28_s17, [#allocation6], %s898_s19, %s898_s19, %s899_s20  }
  0x1a   :  { %888 = dma.done.wait [#allocation3], 1024  }
  0x1b   :  { %889 = vsyncadd [#allocation3], 4294966272 }
  0x1c   :  { %890 = dma.done.wait [#allocation6], 3072  }
  0x1d   :  { %891 = vsyncadd [#allocation6], 4294964224  ;;  %v900_v0 = vmov 0   ;;  %v788_v1 = vld [vmem:[#allocation5 + $0xac] ss:$12 sps:$4 sm:$0xff]   ;;  %v820_v19 = vld [vmem:[#allocation2] sm:$0xff]  }
  0x1e   :  { %297 = vmatprep.mubr.bf16.mxu0 %v900_v0  ;;  %v790_v2 = vld [vmem:[#allocation5 + $0xa8] ss:$12 sps:$4 sm:$0xff]   ;;  %265 = vmatprep.subr.bf16.mxu0 %v788_v1  ;;  %v791_v3 = vld [vmem:[#allocation5 + $0xb0] ss:$12 sps:$4 sm:$0xff]   ;;  %v795_v6 = vld [vmem:[#allocation5 + $0x98] ss:$12 sps:$4 sm:$0xff]  }
  0x1f   :  { %266 = vmatpush1.bf16.msra.mxu0 %v790_v2  ;;  %v792_v4 = vld [vmem:[#allocation5 + $0x94] ss:$12 sps:$4 sm:$0xff]   ;;  %v794_v5 = vld [vmem:[#allocation5 + $0x90] ss:$12 sps:$4 sm:$0xff]   ;;  %748 = vmatprep.subr.bf16.mxu1 %v791_v3  ;;  %v798_v9 = vld [vmem:[#allocation5 + $0x78] ss:$12 sps:$4 sm:$0xff]  }
  0x20   :  { %749 = vmatpush3.bf16.msra.mxu1 %v791_v3  ;;  %267 = vmatprep.subr.bf16.mxu0 %v792_v4  ;;  %v796_v7 = vld [vmem:[#allocation5 + $0x7c] ss:$12 sps:$4 sm:$0xff]   ;;  %v799_v8 = vld [vmem:[#allocation5 + $0x80] ss:$12 sps:$4 sm:$0xff]   ;;  %v800_v10 = vld [vmem:[#allocation5 + $0x64] ss:$12 sps:$4 sm:$0xff]  }
  0x21   :  { %750 = vmatprep.subr.bf16.mxu1 %v795_v6  ;;  %v803_v11 = vld [vmem:[#allocation5 + $0x68] ss:$12 sps:$4 sm:$0xff]   ;;  %v802_v12 = vld [vmem:[#allocation5 + $0x60] ss:$12 sps:$4 sm:$0xff]   ;;  %v807_v14 = vld [vmem:[#allocation5 + $0x50] ss:$12 sps:$4 sm:$0xff]   ;;  %764 = vmatprep.mubr.bf16.mxu1 %v820_v19 }
  0x22   :  { %v804_v13 = vld [vmem:[#allocation5 + $0x4c] ss:$12 sps:$4 sm:$0xff]   ;;  %v806_v15 = vld [vmem:[#allocation5 + $0x48] ss:$12 sps:$4 sm:$0xff]   ;;  %v810_v17 = vld [vmem:[#allocation5 + $0x30] ss:$12 sps:$4 sm:$0xff]  }
  0x23   :  { %268 = vmatpush1.bf16.msra.mxu0 %v794_v5  ;;  %v808_v16 = vld [vmem:[#allocation5 + $0x34] ss:$12 sps:$4 sm:$0xff]   ;;  %v811_v18 = vld [vmem:[#allocation5 + $0x38] ss:$12 sps:$4 sm:$0xff]   ;;  %v812_v20 = vld [vmem:[#allocation5 + $0x1c] ss:$12 sps:$4 sm:$0xff]  }
  0x24   :  { %269 = vmatprep.subr.bf16.mxu0 %v796_v7  ;;  %751 = vmatpush3.bf16.msra.mxu1 %v795_v6  ;;  %v815_v21 = vld [vmem:[#allocation5 + $0x20] ss:$12 sps:$4 sm:$0xff]   ;;  %v814_v22 = vld [vmem:[#allocation5 + $0x18] ss:$12 sps:$4 sm:$0xff]   ;;  %v819_v24 = vld [vmem:[#allocation5 + $0x8] ss:$12 sps:$4 sm:$0xff]  }
  0x25   :  { %752 = vmatprep.subr.bf16.mxu1 %v799_v8  ;;  %v816_v23 = vld [vmem:[#allocation5 + $0x4] ss:$12 sps:$4 sm:$0xff]   ;;  %v818_v25 = vld [vmem:[#allocation5] ss:$12 sps:$4 sm:$0xff]   ;;  %v823_v28 = vld [vmem:[#allocation2 + $0x18] sm:$0xff]   ;;  %s901_s0 = smov [#allocation7]  }
  0x26   :  { %v821_v26 = vld [vmem:[#allocation2 + $0x8] sm:$0xff]   ;;  %v822_v27 = vld [vmem:[#allocation2 + $0x10] sm:$0xff]   ;;  %v824_v29 = vld [vmem:[#allocation2 + $0x20] sm:$0xff]   ;;  %s608_s1 = sshll.u32 %s901_s0, 4  ;;  %s609_s1 = int_to_ptr.vmem [resolvable:$true] %s608_s1 }
  0x27   :  { %270 = vmatpush1.bf16.msra.mxu0 %v798_v9  ;;  %v825_v30 = vld [vmem:[#allocation2 + $0x28] sm:$0xff]   ;;  %v826_v31 = vld [vmem:[#allocation2 + $0x30] sm:$0xff]   ;;  %v827_v32 = vld [vmem:[#allocation2 + $0x38] sm:$0xff]   ;;  %s868_s23 = scalar_lea.vmem %s609_s1, 1024  ;;  %p873_p11 = scmp.lt.s32.totalorder %s609_s1, %s609_s1 }
  0x28   :  { %271 = vmatprep.subr.bf16.mxu0 %v800_v10  ;;  %753 = vmatpush3.bf16.msra.mxu1 %v799_v8  ;;  %p869_p10 = scmp.ne.s32.totalorder %s609_s1, %s868_s23  ;;  %p874_p12 = scmp.lt.s32.totalorder %s868_s23, %s868_s23 }
  0x29   :  { %754 = vmatprep.subr.bf16.mxu1 %v803_v11 }
  0x2a   :  { %p875_p13 = por %p874_p12, %p873_p11 }
  0x2b   :  { %272 = vmatpush1.bf16.msra.mxu0 %v802_v12 }
  0x2c   :  { %273 = vmatprep.subr.bf16.mxu0 %v804_v13  ;;  %755 = vmatpush3.bf16.msra.mxu1 %v803_v11  ;;  %p876_p0 = pnand %p875_p13, %p869_p10 }
  0x2d   :  { %756 = vmatprep.subr.bf16.mxu1 %v807_v14 }
  0x2f   :  { %274 = vmatpush1.bf16.msra.mxu0 %v806_v15 }
  0x30   :  { %275 = vmatprep.subr.bf16.mxu0 %v808_v16  ;;  %757 = vmatpush3.bf16.msra.mxu1 %v807_v14 }
  0x31   :  { %758 = vmatprep.subr.bf16.mxu1 %v811_v18 }
  0x33   :  { %276 = vmatpush1.bf16.msra.mxu0 %v810_v17 }
  0x34   :  { %277 = vmatprep.subr.bf16.mxu0 %v812_v20  ;;  %759 = vmatpush3.bf16.msra.mxu1 %v811_v18 }
  0x35   :  { %760 = vmatprep.subr.bf16.mxu1 %v815_v21 }
  0x37   :  { %278 = vmatpush1.bf16.msra.mxu0 %v814_v22 }
  0x38   :  { %279 = vmatprep.subr.bf16.mxu0 %v816_v23  ;;  %761 = vmatpush3.bf16.msra.mxu1 %v815_v21 }
  0x39   :  { %762 = vmatprep.subr.bf16.mxu1 %v819_v24 }
  0x3b   :  { %280 = vmatpush1.bf16.msra.mxu0 %v818_v25 }
  0x3c   :  { %763 = vmatpush3.bf16.msra.mxu1 %v819_v24 }
  0x3e   :  { %298 = vmatmul.mubr.bf16.vlgmr.msra.gmra.mxu0 %v820_v19 }
  0x3f   :  { %307 = vmatprep.mubr.bf16.mxu0 %v900_v0  ;;  %765 = vmatmul.mubr.bf16.vlgmr.msra.gmra.mxu1 %v821_v26 }
  0x40   :  { %768 = vmatprep.mubr.bf16.mxu1 %v822_v27 }
  0x46   :  { %308 = vmatmul.mubr.bf16.gmra.mxu0 %v821_v26 }
  0x47   :  { %317 = vmatprep.mubr.bf16.mxu0 %v900_v0  ;;  %769 = vmatmul.mubr.bf16.gmra.mxu1 %v823_v28 }
  0x48   :  { %772 = vmatprep.mubr.bf16.mxu1 %v824_v29 }
  0x4e   :  { %318 = vmatmul.mubr.bf16.gmra.mxu0 %v822_v27 }
  0x4f   :  { %327 = vmatprep.mubr.bf16.mxu0 %v900_v0  ;;  %773 = vmatmul.mubr.bf16.gmra.mxu1 %v825_v30 }
  0x50   :  { %776 = vmatprep.mubr.bf16.mxu1 %v826_v31 }
  0x56   :  { %328 = vmatmul.mubr.bf16.gmra.mxu0 %v823_v28 }
  0x57   :  { %337 = vmatprep.mubr.bf16.mxu0 %v900_v0  ;;  %777 = vmatmul.mubr.bf16.gmra.mxu1 %v827_v32 }
  0x5e   :  { %338 = vmatmul.mubr.bf16.gmra.mxu0 %v824_v29 }
  0x5f   :  { %347 = vmatprep.mubr.bf16.mxu0 %v900_v0 }
  0x66   :  { %348 = vmatmul.mubr.bf16.gmra.mxu0 %v825_v30 }
  0x67   :  { %357 = vmatprep.mubr.bf16.mxu0 %v900_v0 }
  0x6e   :  { %358 = vmatmul.mubr.bf16.gmra.mxu0 %v826_v31 }
  0x6f   :  { %367 = vmatprep.mubr.bf16.mxu0 %v900_v0 }
  0x76   :  { %368 = vmatmul.mubr.bf16.gmra.mxu0 %v827_v32 }
  0xfe   :  { %v299_v33 = vpop.f32.mrf.mxu0 }
  0xff   :  { %v766_v35 = vpop.f32.mrf.mxu1 }
 0x100   :  { %v301_v34 = vpop.f32.mrf.mxu0 }
 0x101   :  { %v475_v36 = vmul.f32 %v301_v34, %v299_v33  ;;  %v412_v38 = vpop.f32.mrf.mxu1 }
 0x102   :  { %v303_v37 = vpop.f32.mrf.mxu0 }
 0x103   :  { %v767_v40 = vpop.f32.mrf.mxu1  ;;  %v491_v41 = vadd.f32 %v475_v36, %v412_v38 }
 0x104   :  { %v305_v39 = vpop.f32.mrf.mxu0 }
 0x105   :  { %v476_v42 = vmul.f32 %v305_v39, %v303_v37  ;;  %v415_v44 = vpop.f32.mrf.mxu1  ;;  %v507_v48 = vmax.f32 %v491_v41, 0.0 }
 0x106   :  { %v309_v43 = vpop.f32.mrf.mxu0 }
 0x107   :  { %v492_v45 = vadd.f32 %v476_v42, %v415_v44  ;;  %v770_v47 = vpop.f32.mrf.mxu1 }
 0x108   :  { %v311_v46 = vpop.f32.mrf.mxu0 }
 0x109   :  { %v508_v49 = vmax.f32 %v492_v45, 0.0  ;;  %v477_v50 = vmul.f32 %v311_v46, %v309_v43  ;;  %v428_v54 = vpop.f32.mrf.mxu1 }
 0x10a   :  { %v313_v51 = vpop.f32.mrf.mxu0 }
 0x10b   :  { %v688_v52 = vpack.c.bf16 %v508_v49, %v507_v48  ;;  %v493_v55 = vadd.f32 %v766_v35, %v477_v50  ;;  %v771_v60 = vpop.f32.mrf.mxu1 }
 0x10c   :  { %v315_v53 = vpop.f32.mrf.mxu0 }
 0x10d   :  { %689 = vst [vmem:[#allocation7] sm:$0xff] %v688_v52   ;;  %v478_v56 = vmul.f32 %v315_v53, %v313_v51  ;;  %v509_v61 = vmax.f32 %v493_v55, 0.0  ;;  %v431_v3 = vpop.f32.mrf.mxu1 }
 0x10e   :  { %v319_v57 = vpop.f32.mrf.mxu0 }
 0x10f   :  { %v494_v58 = vadd.f32 %v767_v40, %v478_v56  ;;  %v774_v9 = vpop.f32.mrf.mxu1 }
 0x110   :  { %v321_v59 = vpop.f32.mrf.mxu0 }
 0x111   :  { %v510_v62 = vmax.f32 %v494_v58, 0.0  ;;  %v479_v63 = vmul.f32 %v321_v59, %v319_v57  ;;  %v444_v16 = vpop.f32.mrf.mxu1 }
 0x112   :  { %v323_v0 = vpop.f32.mrf.mxu0 }
 0x113   :  { %v693_v1 = vpack.c.bf16 %v510_v62, %v509_v61  ;;  %v495_v4 = vadd.f32 %v479_v63, %v428_v54  ;;  %v775_v22 = vpop.f32.mrf.mxu1 }
 0x114   :  { %v325_v2 = vpop.f32.mrf.mxu0 }
 0x115   :  { %725 = vst [vmem:[#allocation7 + $0x8] sm:$0xff] %v693_v1   ;;  %v480_v5 = vmul.f32 %v325_v2, %v323_v0  ;;  %v511_v10 = vmax.f32 %v495_v4, 0.0  ;;  %v447_v29 = vpop.f32.mrf.mxu1 }
 0x116   :  { %v329_v6 = vpop.f32.mrf.mxu0 }
 0x117   :  { %v496_v7 = vadd.f32 %v480_v5, %v431_v3  ;;  %v778_v35 = vpop.f32.mrf.mxu1 }
 0x118   :  { %v331_v8 = vpop.f32.mrf.mxu0 }
 0x119   :  { %v512_v11 = vmax.f32 %v496_v7, 0.0  ;;  %v481_v12 = vmul.f32 %v331_v8, %v329_v6  ;;  %v460_v42 = vpop.f32.mrf.mxu1 }
 0x11a   :  { %v333_v13 = vpop.f32.mrf.mxu0 }
 0x11b   :  { %v698_v14 = vpack.c.bf16 %v512_v11, %v511_v10  ;;  %v497_v17 = vadd.f32 %v770_v47, %v481_v12  ;;  %v779_v48 = vpop.f32.mrf.mxu1 }
 0x11c   :  { %v335_v15 = vpop.f32.mrf.mxu0 }
 0x11d   :  { %726 = vst [vmem:[#allocation7 + $0x10] sm:$0xff] %v698_v14   ;;  %v482_v18 = vmul.f32 %v335_v15, %v333_v13  ;;  %v513_v23 = vmax.f32 %v497_v17, 0.0  ;;  %v463_v55 = vpop.f32.mrf.mxu1 }
 0x11e   :  { %v339_v19 = vpop.f32.mrf.mxu0 }
 0x11f   :  { %v498_v20 = vadd.f32 %v771_v60, %v482_v18 }
 0x120   :  { %v341_v21 = vpop.f32.mrf.mxu0 }
 0x121   :  { %v514_v24 = vmax.f32 %v498_v20, 0.0  ;;  %v483_v25 = vmul.f32 %v341_v21, %v339_v19 }
 0x122   :  { %v343_v26 = vpop.f32.mrf.mxu0 }
 0x123   :  { %v703_v27 = vpack.c.bf16 %v514_v24, %v513_v23  ;;  %v499_v30 = vadd.f32 %v483_v25, %v444_v16 }
 0x124   :  { %v345_v28 = vpop.f32.mrf.mxu0 }
 0x125   :  { %727 = vst [vmem:[#allocation7 + $0x18] sm:$0xff] %v703_v27   ;;  %v484_v31 = vmul.f32 %v345_v28, %v343_v26  ;;  %v515_v36 = vmax.f32 %v499_v30, 0.0 }
 0x126   :  { %v349_v32 = vpop.f32.mrf.mxu0 }
 0x127   :  { %v500_v33 = vadd.f32 %v484_v31, %v447_v29 }
 0x128   :  { %v351_v34 = vpop.f32.mrf.mxu0 }
 0x129   :  { %v516_v37 = vmax.f32 %v500_v33, 0.0  ;;  %v485_v38 = vmul.f32 %v351_v34, %v349_v32 }
 0x12a   :  { %v353_v39 = vpop.f32.mrf.mxu0 }
 0x12b   :  { %v708_v40 = vpack.c.bf16 %v516_v37, %v515_v36  ;;  %v501_v43 = vadd.f32 %v774_v9, %v485_v38 }
 0x12c   :  { %v355_v41 = vpop.f32.mrf.mxu0 }
 0x12d   :  { %728 = vst [vmem:[#allocation7 + $0x20] sm:$0xff] %v708_v40   ;;  %v486_v44 = vmul.f32 %v355_v41, %v353_v39  ;;  %v517_v49 = vmax.f32 %v501_v43, 0.0 }
 0x12e   :  { %v359_v45 = vpop.f32.mrf.mxu0 }
 0x12f   :  { %v502_v46 = vadd.f32 %v775_v22, %v486_v44 }
 0x130   :  { %v361_v47 = vpop.f32.mrf.mxu0 }
 0x131   :  { %v518_v50 = vmax.f32 %v502_v46, 0.0  ;;  %v487_v51 = vmul.f32 %v361_v47, %v359_v45 }
 0x132   :  { %v363_v52 = vpop.f32.mrf.mxu0 }
 0x133   :  { %v713_v53 = vpack.c.bf16 %v518_v50, %v517_v49  ;;  %v503_v56 = vadd.f32 %v487_v51, %v460_v42 }
 0x134   :  { %v365_v54 = vpop.f32.mrf.mxu0 }
 0x135   :  { %729 = vst [vmem:[#allocation7 + $0x28] sm:$0xff] %v713_v53   ;;  %v488_v57 = vmul.f32 %v365_v54, %v363_v52  ;;  %v519_v61 = vmax.f32 %v503_v56, 0.0 }
 0x136   :  { %v369_v58 = vpop.f32.mrf.mxu0 }
 0x137   :  { %v504_v59 = vadd.f32 %v488_v57, %v463_v55 }
 0x138   :  { %v371_v60 = vpop.f32.mrf.mxu0 }
 0x139   :  { %v520_v62 = vmax.f32 %v504_v59, 0.0  ;;  %v489_v63 = vmul.f32 %v371_v60, %v369_v58 }
 0x13a   :  { %v373_v0 = vpop.f32.mrf.mxu0 }
 0x13b   :  { %v718_v1 = vpack.c.bf16 %v520_v62, %v519_v61  ;;  %v505_v3 = vadd.f32 %v778_v35, %v489_v63 }
 0x13c   :  { %v375_v2 = vpop.f32.mrf.mxu0 }
 0x13d   :  { %730 = vst [vmem:[#allocation7 + $0x30] sm:$0xff] %v718_v1   ;;  %v490_v4 = vmul.f32 %v375_v2, %v373_v0  ;;  %v521_v6 = vmax.f32 %v505_v3, 0.0 }
 0x13f   :  { %v506_v5 = vadd.f32 %v779_v48, %v490_v4 }
 0x141   :  { %v522_v7 = vmax.f32 %v506_v5, 0.0 }
 0x143   :  { %v723_v8 = vpack.c.bf16 %v522_v7, %v521_v6 }
 0x145   :  { %731 = vst [vmem:[#allocation7 + $0x38] sm:$0xff] %v723_v8  }
 0x146   :  { %879 = shalt.err (!%p876_p0)
}
 0x147   :  { %614 = dma.vmem_to_hbm [thread:$0]  %s609_s1, 1024, %s942_s2, [#allocation4], %s895_s12, %s895_s12, %s896_s13  }
 0x148   :  { %892 = dma.done.wait [#allocation4], 1024  }
 0x149   :  { %893 = vsyncadd [#allocation4], 4294966272 }
 0x14a   :  { %618 = vsyncpa [#allocation3], 1 }
 0x14b   :  { %619 = vsyncpa [#allocation6], 1 }
 0x14c   :  { %620 = vsyncpa [#allocation4], 1 }

</bundles_post_ra>
